<compile_context>
chip_gen: v7x
topology: tpu7x:2x2x1
jax: 0.10.0
libtpu: 0.0.40
codegen_flags: <defaults>
</compile_context>

<pallas_src>
import jax
import jax.numpy as jnp
import numpy as np
from jax.experimental import pallas as pl
from jax.experimental.pallas import tpu as pltpu

_EPS = 1e-5


# --------------------------------------------------------------------------- #
# VMEM budgeting helpers (v5e/v6e: 128 MiB physical, v7x: 64 MiB per core).    #
# --------------------------------------------------------------------------- #
def _vmem_limit_bytes():
    """~3/4 of physical per-core VMEM, capped at 96 MiB; 48 MiB fallback
    (safe on every generation, including v7x)."""
    try:
        cap = int(pltpu.get_tpu_info().vmem_capacity_bytes)
    except Exception:
        cap = 64 << 20
    return int(min(cap * 3 // 4, 96 << 20))


def _lane_tile(total, bytes_per_lane, budget):
    """Lane (last-dim) tile: the full extent if it fits, else the largest
    multiple of 128 whose estimated footprint fits `budget` (>= 128)."""
    if total * bytes_per_lane <= budget:
        return int(total)
    t = (budget // bytes_per_lane) // 128 * 128
    return int(max(t, 128))


def _channel_block(c, hw, per_elem_bytes, budget, min_blocks):
    """Channel (sublane) rows per fused block: a multiple-of-8 divisor of `c`
    (or `c` itself) whose (rows, hw) block fits `budget`; prefer a split into
    >= `min_blocks` blocks so both TensorCores get work when N is small."""
    cands = [c] + [d for d in range(8, c, 8) if c % d == 0]
    fits = [d for d in cands if d * hw * per_elem_bytes <= budget]
    if not fits:
        return None
    pref = [d for d in fits if c // d >= min_blocks]
    return max(pref) if pref else max(fits)


# --------------------------------------------------------------------------- #
# Kernels.                                                                     #
# --------------------------------------------------------------------------- #
def _make_stats_kernel(hw, hw_t, masked):
    """Per-(n, c) sum / sum-of-squares accumulated over lane (HW) tiles into
    resident (1, C_blk, 1) f32 output blocks."""

    def kernel(x_ref, sum_ref, ssq_ref):
        @pl.when(pl.program_id(1) == 0)
        def _init():
            sum_ref[...] = jnp.zeros_like(sum_ref)
            ssq_ref[...] = jnp.zeros_like(ssq_ref)

        x = x_ref[...].astype(jnp.float32)
        if masked:  # ragged tail tile: zero out-of-range lanes before reducing
            lane = jax.lax.broadcasted_iota(jnp.int32, x.shape, 2)
            x = jnp.where(pl.program_id(1) * hw_t + lane < hw, x, 0.0)
        # TODO(synk): v7x micro-opt — accumulate into a (C_blk, 128) f32 VMEM
        # scratch with VALU adds and do one cross-lane reduce on the last tile.
        sum_ref[...] += jnp.sum(x, axis=-1, keepdims=True)
        ssq_ref[...] += jnp.sum(x * x, axis=-1, keepdims=True)

    return kernel


def _apply_kernel(x_ref, sc_ref, sh_ref, o_ref):
    """y = x * scale + shift (per-(n, c) folded normalization + affine)."""
    x = x_ref[...].astype(jnp.float32)
    o_ref[...] = (x * sc_ref[...] + sh_ref[...]).astype(o_ref.dtype)


def _make_fused_kernel(hw, eps):
    """Single-read IN+BN apply on a resident (1, C_blk, HW) slab.

    IN channels: per-(n, c) mean / exact two-pass variance computed in-kernel.
    BN channels: precomputed batch scale/shift, selected by a per-channel mask.
    """
    inv_hw = 1.0 / hw

    def kernel(x_ref, g_ref, b_ref, m_ref, bsc_ref, bsh_ref, o_ref):
        x = x_ref[...].astype(jnp.float32)                      # (1, C_blk, HW)
        mean = jnp.sum(x, axis=-1, keepdims=True) * inv_hw
        xc = x - mean
        var = jnp.sum(xc * xc, axis=-1, keepdims=True) * inv_hw
        in_sc = g_ref[...] * jax.lax.rsqrt(var + eps)
        in_sh = b_ref[...] - mean * in_sc
        is_bn = m_ref[...] > 0.5
        scale = jnp.where(is_bn, bsc_ref[...], in_sc)
        shift = jnp.where(is_bn, bsh_ref[...], in_sh)
        o_ref[...] = (x * scale + shift).astype(o_ref.dtype)

    return kernel


# --------------------------------------------------------------------------- #
# Wrapper pieces.                                                              #
# --------------------------------------------------------------------------- #
def _run_stats(x3, c0, cs, hw_t, vmem_limit):
    """Per-(n, c) sum / sum-of-squares over HW for channels [c0, c0+cs)."""
    N, _, HW = x3.shape
    n_hw = pl.cdiv(HW, hw_t)
    masked = (hw_t < HW) and (HW % hw_t != 0)
    cb = c0 // cs  # channel *block* index (c0 is a multiple of cs by construction)
    s, ss = pl.pallas_call(
        _make_stats_kernel(HW, hw_t, masked),
        grid=(N, n_hw),
        in_specs=[pl.BlockSpec((1, cs, hw_t), lambda n, j: (n, cb, j))],
        out_specs=[pl.BlockSpec((1, cs, 1), lambda n, j: (n, 0, 0)),
                   pl.BlockSpec((1, cs, 1), lambda n, j: (n, 0, 0))],
        out_shape=[jax.ShapeDtypeStruct((N, cs, 1), jnp.float32),
                   jax.ShapeDtypeStruct((N, cs, 1), jnp.float32)],
        compiler_params=pltpu.CompilerParams(
            # TODO(synk): v7x + N == 1 — add an outer parallel HW-chunk axis so
            # both TensorCores share the reduction (partial sums per chunk).
            dimension_semantics=("parallel", "arbitrary"),
            vmem_limit_bytes=vmem_limit),
    )(x3)
    return s[..., 0], ss[..., 0]  # (N, cs) each


def _bn_fold(s_bn, ss_bn, gamma_bn, beta_bn, count, eps):
    """Fold batch (training-mode, biased-var) statistics + affine into
    per-channel scale/shift.

    NOTE: E[x^2] - mean^2 (clamped at 0) can lose precision when |mean| >> std
    over very large reductions; acceptable for activations, documented here.
    """
    mean = jnp.sum(s_bn, axis=0) / count
    var = jnp.maximum(jnp.sum(ss_bn, axis=0) / count - mean * mean, 0.0)
    sc = gamma_bn.astype(jnp.float32) * jax.lax.rsqrt(var + eps)
    sh = beta_bn.astype(jnp.float32) - mean * sc
    return sc, sh  # (c_bn,) each


def ibn2d_forward(x, gamma_in, beta_in, gamma_bn, beta_bn, *, half, eps=_EPS,
                  donate_x=False, _force_two_pass=False):
    """IBN2D forward (PyTorch module in .train() mode).

    Channels [0, half)  -> InstanceNorm2d(affine=True)  (per-sample stats)
    Channels [half, C)  -> BatchNorm2d                  (batch stats, biased var)
    """
    N, C, H, W = x.shape
    HW = H * W
    c_bn = C - half
    assert 0 <= half <= C
    x3 = x.reshape(N, C, HW)

    itemsize = jnp.dtype(x.dtype).itemsize          # no f32 floor: bf16 gets 2 B
    vmem_limit = _vmem_limit_bytes()
    io_alias = {0: 0} if donate_x else {}

    # ---- Fused single-read path --------------------------------------------
    # Usable when the IN half is non-empty, the BN channel range [half, C) can
    # be addressed as whole sublane-aligned blocks (so the stats sweep does not
    # have to touch the IN channels), and a (1, C_blk, HW) slab fits VMEM.
    bn_aligned = (c_bn == 0) or (c_bn % 8 == 0 and half % c_bn == 0)
    c_blk = None
    if half > 0 and bn_aligned and not _force_two_pass:
        c_blk = _channel_block(
            C, HW,
            per_elem_bytes=4 * itemsize + 16,        # 2x(in+out) bufs + f32 temps
            budget=(vmem_limit * 2) // 3,
            min_blocks=2 if N == 1 else 1)           # megacore when N is tiny

    if c_blk is not None:
        # Batch statistics for the BN channels only (reads just [half, C)).
        if c_bn > 0:
            hw_s = _lane_tile(HW, c_bn * (2 * itemsize + 8), vmem_limit // 2)
            s, ss = _run_stats(x3, half, c_bn, hw_s, vmem_limit)
            sc_bn, sh_bn = _bn_fold(s, ss, gamma_bn, beta_bn, N * HW, eps)
        else:
            sc_bn = jnp.zeros((0,), jnp.float32)
            sh_bn = jnp.zeros((0,), jnp.float32)

        f32 = jnp.float32
        gamma = jnp.concatenate([gamma_in.astype(f32).reshape((half,)),
                                 gamma_bn.astype(f32).reshape((c_bn,))])
        beta = jnp.concatenate([beta_in.astype(f32).reshape((half,)),
                                beta_bn.astype(f32).reshape((c_bn,))])
        is_bn = jnp.concatenate([jnp.zeros((half,), f32), jnp.ones((c_bn,), f32)])
        bn_sc = jnp.concatenate([jnp.zeros((half,), f32), sc_bn])
        bn_sh = jnp.concatenate([jnp.zeros((half,), f32), sh_bn])
        params = [p.reshape(1, C, 1) for p in (gamma, beta, is_bn, bn_sc, bn_sh)]

        xy_spec = pl.BlockSpec((1, c_blk, HW), lambda n, c: (n, c, 0))
        p_spec = pl.BlockSpec((1, c_blk, 1), lambda n, c: (0, c, 0))
        y3 = pl.pallas_call(
            _make_fused_kernel(HW, eps),
            grid=(N, C // c_blk),
            in_specs=[xy_spec] + [p_spec] * 5,
            out_specs=xy_spec,
            out_shape=jax.ShapeDtypeStruct((N, C, HW), x.dtype),
            compiler_params=pltpu.CompilerParams(
                dimension_semantics=("parallel", "parallel"),
                vmem_limit_bytes=vmem_limit),
            input_output_aliases=io_alias,
        )(x3, *params)
        return y3.reshape(N, C, H, W)

    # ---- Two-pass tiled fallback --------------------------------------------
    # Pass 1: per-(n, c) sum / sum-of-squares over the spatial axis (all C).
    hw_s = _lane_tile(HW, C * (2 * itemsize + 8), vmem_limit // 2)   # big tiles
    s, ss = _run_stats(x3, 0, C, hw_s, vmem_limit)

    # Fold statistics + affine into per-(n, c) scale/shift (tiny XLA math).
    parts_sc, parts_sh = [], []
    if half > 0:
        g = gamma_in.astype(jnp.float32)[None, :]
        b = beta_in.astype(jnp.float32)[None, :]
        mean = s[:, :half] / HW
        var = jnp.maximum(ss[:, :half] / HW - mean * mean, 0.0)
        sc = g * jax.lax.rsqrt(var + eps)
        parts_sc.append(sc)
        parts_sh.append(b - mean * sc)
    if c_bn > 0:
        sc_bn, sh_bn = _bn_fold(s[:, half:], ss[:, half:], gamma_bn, beta_bn,
                                N * HW, eps)
        parts_sc.append(jnp.broadcast_to(sc_bn[None, :], (N, c_bn)))
        parts_sh.append(jnp.broadcast_to(sh_bn[None, :], (N, c_bn)))
    scale = jnp.concatenate(parts_sc, axis=1)[..., None]   # (N, C, 1) f32
    shift = jnp.concatenate(parts_sh, axis=1)[..., None]   # (N, C, 1) f32

    # Pass 2: y = x * scale + shift, fully parallel, lane-dense output tiles.
    hw_a = _lane_tile(HW, C * (4 * itemsize + 8), vmem_limit // 2)
    n_hw_a = pl.cdiv(HW, hw_a)
    y3 = pl.pallas_call(
        _apply_kernel,
        grid=(N, n_hw_a),
        in_specs=[pl.BlockSpec((1, C, hw_a), lambda n, j: (n, 0, j)),
                  pl.BlockSpec((1, C, 1), lambda n, j: (n, 0, 0)),
                  pl.BlockSpec((1, C, 1), lambda n, j: (n, 0, 0))],
        out_specs=pl.BlockSpec((1, C, hw_a), lambda n, j: (n, 0, j)),
        out_shape=jax.ShapeDtypeStruct((N, C, HW), x.dtype),
        compiler_params=pltpu.CompilerParams(
            dimension_semantics=("parallel", "parallel"),
            vmem_limit_bytes=vmem_limit),
        input_output_aliases=io_alias,
    )(x3, scale, shift)
    return y3.reshape(N, C, H, W)


def ibn2d_reference(x, gamma_in, beta_in, gamma_bn, beta_bn, *, half, eps=_EPS):
    """Plain-JAX reference mirroring the PyTorch forward (training mode)."""
    x = x.astype(jnp.float32)
    x_in, x_bn = x[:, :half], x[:, half:]
    m = jnp.mean(x_in, axis=(2, 3), keepdims=True)
    v = jnp.mean((x_in - m) ** 2, axis=(2, 3), keepdims=True)
    y_in = (x_in - m) * jax.lax.rsqrt(v + eps)
    y_in = y_in * gamma_in[None, :, None, None] + beta_in[None, :, None, None]
    m = jnp.mean(x_bn, axis=(0, 2, 3), keepdims=True)
    v = jnp.mean((x_bn - m) ** 2, axis=(0, 2, 3), keepdims=True)
    y_bn = (x_bn - m) * jax.lax.rsqrt(v + eps)
    y_bn = y_bn * gamma_bn[None, :, None, None] + beta_bn[None, :, None, None]
    return jnp.concatenate([y_in, y_bn], axis=1)


if __name__ == "__main__":
    # IBN2D(planes=16, ratio=0.5) -> half = 8 (even split, as in the paper).
    N, C, H, W = 2, 16, 16, 16
    half = int(C * 0.5)

    key = jax.random.PRNGKey(0)
    kx, k1, k2, k3, k4 = jax.random.split(key, 5)
    x = jax.random.normal(kx, (N, C, H, W), dtype=jnp.float32)
    gamma_in = 1.0 + 0.1 * jax.random.normal(k1, (half,), dtype=jnp.float32)
    beta_in = 0.1 * jax.random.normal(k2, (half,), dtype=jnp.float32)
    gamma_bn = 1.0 + 0.1 * jax.random.normal(k3, (C - half,), dtype=jnp.float32)
    beta_bn = 0.1 * jax.random.normal(k4, (C - half,), dtype=jnp.float32)

    ref = ibn2d_reference(x, gamma_in, beta_in, gamma_bn, beta_bn, half=half)

    # Fused single-read path (default for this shape).
    out = ibn2d_forward(x, gamma_in, beta_in, gamma_bn, beta_bn, half=half)
    out = jax.block_until_ready(out)
    np.testing.assert_allclose(np.asarray(out), np.asarray(ref),
                               rtol=1e-4, atol=1e-5)

    # Two-pass tiled fallback path (used for slabs that do not fit VMEM).
    out2 = ibn2d_forward(x, gamma_in, beta_in, gamma_bn, beta_bn, half=half,
                         _force_two_pass=True)
    out2 = jax.block_until_ready(out2)
    np.testing.assert_allclose(np.asarray(out2), np.asarray(ref),
                               rtol=1e-4, atol=1e-5)

    print("KERNEL_OK")
</pallas_src>

<mosaic_0001>
module attributes {stable_mosaic.version = 11 : i64} {
  func.func @kernel(%arg0: i32, %arg1: i32, %arg2: memref<1x8x256xf32, #tpu.memory_space<vmem>>, %arg3: memref<1x8x1xf32, #tpu.memory_space<vmem>>, %arg4: memref<1x8x1xf32, #tpu.memory_space<vmem>>) attributes {dimension_semantics = [#tpu.dimension_semantics<parallel>, #tpu.dimension_semantics<arbitrary>], iteration_bounds = array<i64: 2, 1>, scalar_prefetch = 0 : i64, scratch_operands = 0 : i64, tpu.core_type = #tpu.core_type<tc>, window_params = [{transform_indices = @transform_0, window_bounds = array<i64: 1, 8, 256>}, {transform_indices = @transform_1, window_bounds = array<i64: 1, 8, 1>}, {transform_indices = @transform_2, window_bounds = array<i64: 1, 8, 1>}]} {
    %c0_i32 = arith.constant 0 : i32
    %0 = arith.cmpi eq, %arg1, %c0_i32 : i32
    %1 = arith.extui %0 : i1 to i32
    %c0_i32_0 = arith.constant 0 : i32
    %2 = arith.cmpi ne, %1, %c0_i32_0 : i32
    scf.if %2 {
      %cst_16 = arith.constant 0.000000e+00 : f32
      %15 = vector.broadcast %cst_16 : f32 to vector<1x8x1xf32>
      %c0_17 = arith.constant 0 : index
      %c0_18 = arith.constant 0 : index
      %c0_19 = arith.constant 0 : index
      %16 = vector.load %arg3[%c0_17, %c0_18, %c0_19] : memref<1x8x1xf32, #tpu.memory_space<vmem>>, vector<1x8x1xf32>
      tpu.vector_store %arg3[%c0_17, %c0_18, %c0_19], %15 {strides = array<i32>} : memref<1x8x1xf32, #tpu.memory_space<vmem>>, vector<1x8x1xf32>,
      %cst_20 = arith.constant 0.000000e+00 : f32
      %17 = vector.broadcast %cst_20 : f32 to vector<1x8x1xf32>
      %c0_21 = arith.constant 0 : index
      %c0_22 = arith.constant 0 : index
      %c0_23 = arith.constant 0 : index
      %18 = vector.load %arg4[%c0_21, %c0_22, %c0_23] : memref<1x8x1xf32, #tpu.memory_space<vmem>>, vector<1x8x1xf32>
      tpu.vector_store %arg4[%c0_21, %c0_22, %c0_23], %17 {strides = array<i32>} : memref<1x8x1xf32, #tpu.memory_space<vmem>>, vector<1x8x1xf32>,
    } else {
    }
    %c0 = arith.constant 0 : index
    %c0_1 = arith.constant 0 : index
    %c0_2 = arith.constant 0 : index
    %3 = vector.load %arg2[%c0, %c0_1, %c0_2] : memref<1x8x256xf32, #tpu.memory_space<vmem>>, vector<1x8x256xf32>
    %c0_3 = arith.constant 0 : index
    %c0_4 = arith.constant 0 : index
    %c0_5 = arith.constant 0 : index
    %4 = vector.load %arg3[%c0_3, %c0_4, %c0_5] : memref<1x8x1xf32, #tpu.memory_space<vmem>>, vector<1x8x1xf32>
    %cst = arith.constant dense<0.000000e+00> : vector<1x8xf32>
    %5 = vector.multi_reduction <add>, %3, %cst [2] : vector<1x8x256xf32> to vector<1x8xf32>
    %6 = vector.shape_cast %5 : vector<1x8xf32> to vector<1x8x1xf32>
    %7 = arith.addf %4, %6 : vector<1x8x1xf32>
    %c0_6 = arith.constant 0 : index
    %c0_7 = arith.constant 0 : index
    %c0_8 = arith.constant 0 : index
    %8 = vector.load %arg3[%c0_6, %c0_7, %c0_8] : memref<1x8x1xf32, #tpu.memory_space<vmem>>, vector<1x8x1xf32>
    tpu.vector_store %arg3[%c0_6, %c0_7, %c0_8], %7 {strides = array<i32>} : memref<1x8x1xf32, #tpu.memory_space<vmem>>, vector<1x8x1xf32>,
    %c0_9 = arith.constant 0 : index
    %c0_10 = arith.constant 0 : index
    %c0_11 = arith.constant 0 : index
    %9 = vector.load %arg4[%c0_9, %c0_10, %c0_11] : memref<1x8x1xf32, #tpu.memory_space<vmem>>, vector<1x8x1xf32>
    %10 = arith.mulf %3, %3 : vector<1x8x256xf32>
    %cst_12 = arith.constant dense<0.000000e+00> : vector<1x8xf32>
    %11 = vector.multi_reduction <add>, %10, %cst_12 [2] : vector<1x8x256xf32> to vector<1x8xf32>
    %12 = vector.shape_cast %11 : vector<1x8xf32> to vector<1x8x1xf32>
    %13 = arith.addf %9, %12 : vector<1x8x1xf32>
    %c0_13 = arith.constant 0 : index
    %c0_14 = arith.constant 0 : index
    %c0_15 = arith.constant 0 : index
    %14 = vector.load %arg4[%c0_13, %c0_14, %c0_15] : memref<1x8x1xf32, #tpu.memory_space<vmem>>, vector<1x8x1xf32>
    tpu.vector_store %arg4[%c0_13, %c0_14, %c0_15], %13 {strides = array<i32>} : memref<1x8x1xf32, #tpu.memory_space<vmem>>, vector<1x8x1xf32>,
    return
  }
  func.func @transform_0(%arg0: i32, %arg1: i32) -> (i32, i32, i32) {
    %c1_i32 = arith.constant 1 : i32
    %c0_i32 = arith.constant 0 : i32
    return %arg0, %c1_i32, %arg1 : i32, i32, i32
  }
  func.func @transform_1(%arg0: i32, %arg1: i32) -> (i32, i32, i32) {
    %c0_i32 = arith.constant 0 : i32
    %c0_i32_0 = arith.constant 0 : i32
    %c0_i32_1 = arith.constant 0 : i32
    return %arg0, %c0_i32, %c0_i32_0 : i32, i32, i32
  }
  func.func @transform_2(%arg0: i32, %arg1: i32) -> (i32, i32, i32) {
    %c0_i32 = arith.constant 0 : i32
    %c0_i32_0 = arith.constant 0 : i32
    %c0_i32_1 = arith.constant 0 : i32
    return %arg0, %c0_i32, %c0_i32_0 : i32, i32, i32
  }
}

</mosaic_0001>

<bundles_post_ra>
// kernel: tpu_custom_call.1
= control target key start
LH: loop header
LB: loop body
LE: loop exit
PB: predicated region body
PF: predicated region fallthrough
CT: control target
= control target key end

     0   :  { %8 = vsyncpa [#allocation3], 0  ;;  %s622_s0 = inlined_call_operand.hbm [shape: f32[2,16,256], index: 0, kind: input, shape index: {}]   ;;  %s623_s1 = inlined_call_operand.vmem [shape: f32[2,8,1], index: 1, kind: output, shape index: {0}]   ;;  %s624_s2 = inlined_call_operand.vmem [shape: f32[2,8,1], index: 2, kind: output, shape index: {1}]  }
   0x1   :  { %10 = vsyncpa [#allocation3 + $0x1], 0  ;;  %s491_s9 = smov 0   ;;  %s493_s10 = smov 0  }
   0x2   :  { %s495_s11 = smov 0   ;;  %s497_s12 = smov 0  }
   0x3   :  { %s499_s13 = smov 0   ;;  %s501_s14 = smov 0  }
   0x4 LB: > { %s321_s15 = sadd.s32 4294967295, %s472_s14   ;;  %s28_s16 = sadd.s32 1, %s468_s13  ;;  %s472_s14 = sphi %s501_s14, %s16_s14   ;;  %s468_s13 = sphi %s499_s13, %s634_s13   ;;  %s464_s12 = sphi %s497_s12, %s633_s12   ;;  %s460_s11 = sphi %s495_s11, %s632_s11   ;;  %s456_s10 = sphi %s493_s10, %s631_s10   ;;  %s452_s9 = sphi %s491_s9, %s630_s9  }
   0x5   : > { %p30_p0 = scmp.ge.s32.totalorder %s28_s16, 2  ;;  %s37_s17 = sadd.s32 1, %s460_s11 }
   0x6   : > { %p44_p1 = scmp.ne.s32.totalorder %s460_s11, %s456_s10  ;;  %p45_p2 = scmp.eq.s32.totalorder %s472_s14, 0 }
   0x7   : > { %s636_s16 = smov (%p30_p0, %s28_s16), 0  ;;  %p50_p4 = scmp.ne.s32.totalorder %s456_s10, %s452_s9 }
   0x8   : > { %p527_p3 = por %p45_p2, %p44_p1  ;;  %s32_s19 = ssub.s32 %s468_s13, %s636_s16 }
   0x9   : > { %p51_p5 = scmp.eq.s32.totalorder %s321_s15, 0  ;;  %p35_p6 = scmp.eq.s32.totalorder %s32_s19, 0 }
   0xa   : > { %p341_p8 = scmp.lt.s32.totalorder %s472_s14, 2  ;;  %s126_s22 = sand.u32 1, %s460_s11  }
   0xb   : > { %p534_p7 = por %p51_p5, %p50_p4  ;;  %s334_s23 = sshll.u32 %s468_s13, 9 }
   0xc   : > { %s540_s21 = scalar_select %p35_p6, %s460_s11, %s37_s17  }
   0xd   : > { %s325_s24 = sshll.u32 %s126_s22, 4  ;;  %s256_s27 = scalar_lea.hbm %s622_s0, %s334_s23 }
   0xe   : > { %s547_s28 = scalar_lea.hbm %s256_s27, 256  ;;  %s130_s29 = scalar_lea.vmem [#allocation2], %s325_s24 }
   0xf   : > { %s141_s30 = sshll.u32 %s130_s29, 4  ;;  %p553_p9 = pnand %p341_p8, %p527_p3  ;;  %s549_s30 = int_to_ptr.vmem [resolvable:$true] %s141_s30 }
  0x10   : > { %s127_s4 = scalar_lea.sflag [#allocation3], %s126_s22  ;;  %s421_s5 = scalar_lea.hbm %s256_s27, 512 }
  0x11   : > { %p392_p12 = scmp.ne.s32.totalorder %s547_s28, %s421_s5  ;;  %p393_p13 = pneg %p553_p9 }
  0x12   : > { %s396_s8 = scalar_lea.hbm %s622_s0, 1024  ;;  %p397_p2 = scmp.lt.u32.totalorder %s547_s28, %s622_s0 }
  0x13   : > { %p394_p0 = pnand %p393_p13, %p392_p12  ;;  %p398_p3 = scmp.lt.u32.totalorder %s396_s8, %s421_s5 }
  0x14   : > { %p400_p5 = scmp.lt.u32.totalorder %s421_s5, %s547_s28 }
  0x15   : > { %p395_p1 = pneg %p394_p0  ;;  %p399_p4 = por %p398_p3, %p397_p2 }
  0x17   : > { %p401_p6 = por %p400_p5, %p399_p4 }
  0x19   : > { %p402_p8 = pnand %p401_p6, %p395_p1 }
  0x1b   : > { %405 = shalt.err (!%p402_p8)
}
  0x1c   : > { %s406_s17 = scalar_lea.vmem %s549_s30, 256  ;;  %s474_s18 = smov [#allocation2]  }
  0x1d   : > { %p407_p12 = scmp.ne.s32.totalorder %s549_s30, %s406_s17  ;;  %s411_s19 = sshll.u32 %s474_s18, 4  ;;  %s412_s19 = int_to_ptr.vmem [resolvable:$false] %s411_s19 }
  0x1e   : > { %s413_s22 = scalar_lea.vmem %s412_s19, 512  ;;  %p414_p11 = scmp.lt.s32.totalorder %s549_s30, %s412_s19 }
  0x1f   : > { %p409_p0 = pnand %p407_p12, %p393_p13  ;;  %p415_p2 = scmp.lt.s32.totalorder %s413_s22, %s406_s17 }
  0x21   : > { %p410_p10 = pneg %p409_p0  ;;  %p416_p3 = por %p415_p2, %p414_p11 }
  0x23   : > { %p417_p4 = pnand %p416_p3, %p410_p10 }
  0x25   : > { %420 = shalt.err (!%p417_p4)
}
  0x26   : > { %340 = dma.hbm_to_vmem [thread:$0]  (!%p553_p9), %s547_s28, 256, %s549_s30, %s127_s4  }
  0x27   : > { %p628_p1 = scmp.lt.s32.totalorder %s472_s14, 3  ;;  %p629_p5 = scmp.ge.s32.totalorder %s472_s14, 1 }
  0x29   : > { %p147_p13 = pnand %p629_p5, %p628_p1 }
  0x2a   : > { %s152_s23 = sand.u32 (!%p147_p13), 1, %s456_s10  }
  0x2b   : > { %150 = sbr.rel (%p147_p13) target bundleno = 203 (0xcb), region = 24  ;;  %s329_s24 = sshll.u32 (!%p147_p13), %s152_s23, 4 }
  0x2c   : > { %s153_s25 = scalar_lea.sflag (!%p147_p13), [#allocation3], %s152_s23  ;;  %s156_s26 = scalar_lea.vmem (!%p147_p13), [#allocation2], %s329_s24 }
  0x32   : > { %447 = dma.done.wait (%p534_p7), %s153_s25, 256  }
  0x33   : > { %449 = vsyncadd (%p534_p7), %s153_s25, 4294967040  ;;  %p181_p10 = scmp.lt.s32.totalorder %s464_s12, 1  ;;  %vm193_vm0 = vcmask 7168   ;;  %v475_v0 = vmov 0.0   ;;  %v196_v1 = vld [vmem:[%s156_s26] sm:$0xff]  ;;  %v197_v2 = vld [vmem:[%s156_s26 + $0x8] sm:$0xff] }
  0x34   : > { %v199_v3 = vadd.f32 %v197_v2, %v196_v1  ;;  %v206_v4 = vmul.f32 %v196_v1, %v196_v1  ;;  %v207_v5 = vmul.f32 %v197_v2, %v197_v2 }
  0x35   : > { %s638_s12 = smov (!%p181_p10, %s464_s12), 1 }
  0x36   : > { %s330_s27 = sshll.u32 %s638_s12, 3  ;;  %200 = vadd.xlane.f32.xlu0 %v199_v3  ;;  %v208_v6 = vadd.f32 %v207_v5, %v206_v4 }
  0x37   : > { %s184_s30 = scalar_lea.vmem %s623_s1, %s330_s27  ;;  %s188_s4 = scalar_lea.vmem %s624_s2, %s330_s27 }
  0x38   : > { %194 = vst.msk [vmem:[%s184_s30] sm:$0xff] %vm193_vm0, %v475_v0  ;;  %195 = vst.msk [vmem:[%s188_s4] sm:$0xff] %vm193_vm0, %v475_v0 }
  0x3a   : > { %209 = vadd.xlane.f32.xlu0 %v208_v6 }
  0x3f   : > { %v198_v7 = vld [vmem:[%s184_s30] sm:$0xff] }
  0x40   : > { %v205_v10 = vld [vmem:[%s188_s4] sm:$0xff] }
  0xc3   : > { %v201_v8 = vpop.xlane.xlu0 %200 }
  0xc4   : > { %v202_v9 = vadd.f32 %v201_v8, %v198_v7 }
  0xc6   : > { %204 = vst.msk [vmem:[%s184_s30] sm:$0xff] %vm193_vm0, %v202_v9 }
  0xc7   : > { %v210_v11 = vpop.xlane.xlu0 %209 }
  0xc8   : > { %v211_v12 = vadd.f32 %v210_v11, %v205_v10 }
  0xca   : > { %212 = vst.msk [vmem:[%s188_s4] sm:$0xff] %vm193_vm0, %v211_v12 }
  0xcb PF: > { %s16_s14 = sadd.s32 1, %s472_s14   ;;  %s630_s9 = smov %s456_s10 }
  0xcc   : > { %p13_p7 = scmp.ge.s32.totalorder %s16_s14, 4   ;;  %s631_s10 = smov %s460_s11 }
  0xcd   : > { %s632_s11 = smov %s540_s21  ;;  %s633_s12 = smov %s468_s13 }
  0xce   : > { %s634_s13 = smov %s636_s16  ;;  %15 = sbr.rel (!%p13_p7) target bundleno = 4 (0x4), region = 80 }
  0xd5   :  { %246 = vsyncpa [#allocation3], 1 }
  0xd6   :  { %248 = vsyncpa [#allocation3 + $0x1], 1 }

</bundles_post_ra>
